<compile_context>
chip_gen: v6e
topology: v6e:2x2x1
jax: 0.10.0
libtpu: 0.0.40
codegen_flags: <defaults>
</compile_context>

<pallas_src>
import functools

import jax
import jax.numpy as jnp
from jax.experimental import pallas as pl
from jax.experimental.pallas import tpu as pltpu


_PAD_LOGIT = -1e4   # with target 0: bce == 0 and (1 - pt) == 0  =>  focal == 0


def _round_up(n, m):
    return ((n + m - 1) // m) * m


def _min_sublane(dtype):
    # Minimum sublane tile for a packed dtype: f32 -> 8, bf16 -> 16, int8 -> 32.
    return max(8, 32 // jnp.dtype(dtype).itemsize)


def _focal_elements(x, t, alpha, gamma, binary_targets):
    """Per-element focal loss; BCE matches torch.nn.BCEWithLogitsLoss:
    max(x,0) - x*t + log(1 + exp(-|x|))."""
    e = jnp.exp(-jnp.abs(x))                           # one EUP exp, reused below
    bce = jnp.maximum(x, 0.0) - x * t + jnp.log(1.0 + e)
    if binary_targets:
        # pt = exp(-bce) == sigmoid((2t-1)*x) exactly for t in {0,1}; reuse
        # exp(-|x|) + one reciprocal instead of a second full exp.
        sig = 1.0 / (1.0 + e)                          # sigmoid(|x|)
        pt = jnp.where((2.0 * t - 1.0) * x >= 0.0, sig, e * sig)
    else:
        pt = jnp.exp(-bce)
    w = 1.0 - pt
    g = float(gamma)
    if g == int(g) and 0 <= int(g) <= 8:
        # Integer gamma: repeated multiply (exact, no EUP log/exp, no eps hack).
        n = int(g)
        pow_w = jnp.ones_like(w) if n == 0 else w
        for _ in range(n - 1):
            pow_w = pow_w * w
    else:
        pow_w = jnp.where(w > 0.0,
                          jnp.exp(g * jnp.log(jnp.maximum(w, 1e-30))),
                          0.0)
    return alpha * pow_w * bce


def _focal_partial_kernel(x_ref, t_ref, o_ref, *, alpha, gamma, binary_targets):
    x = x_ref[...].astype(jnp.float32)
    t = t_ref[...].astype(jnp.float32)
    focal = _focal_elements(x, t, alpha, gamma, binary_targets)
    tb, cp = focal.shape
    # Fold row-groups of 8 with pure VPU vreg adds; the single cross-lane /
    # cross-sublane reduce happens once, outside the pallas_call.
    o_ref[...] = jnp.sum(focal.reshape(tb // 8, 8, cp), axis=0)


def _focal_elementwise_kernel(x_ref, t_ref, o_ref, *, alpha, gamma, binary_targets):
    x = x_ref[...].astype(jnp.float32)
    t = t_ref[...].astype(jnp.float32)
    o_ref[...] = _focal_elements(x, t, alpha, gamma,
                                 binary_targets).astype(o_ref.dtype)


def focal_loss(inputs, targets, alpha=1.0, gamma=2.0, reduction="mean",
               binary_targets=True):
    """Pallas TPU implementation of FocalLoss.forward.

    binary_targets=True enables the exact-for-{0,1}-targets fast path for pt
    (reuses exp(-|x|)); pass binary_targets=False for soft targets to compute
    pt = exp(-bce) literally.  Targets may be supplied as bf16/int8 to cut
    HBM traffic; they are cast to f32 inside the kernel.
    """
    assert inputs.shape == targets.shape and inputs.ndim == 2, "expects (B, C)"
    B, C = inputs.shape
    x_item = jnp.dtype(inputs.dtype).itemsize
    t_item = jnp.dtype(targets.dtype).itemsize
    row_align = max(_min_sublane(inputs.dtype), _min_sublane(targets.dtype))

    Cp = _round_up(C, 128)

    # Row-tile sizing: keep the double-buffered live set around ~12 MiB so it
    # fits every generation's scoped-VMEM budget (v5e 16 MiB scoped default,
    # v7x 64 MiB physical) while amortizing the ~0.35 us per-grid-step cost.
    live_budget = 12 << 20
    bytes_per_row = 2 * Cp * (x_item + t_item)          # double-buffered inputs
    if reduction == "none":
        bytes_per_row += 2 * Cp * 4                     # double-buffered output
    tb = (live_budget // bytes_per_row) // row_align * row_align
    tb = max(row_align, min(tb, 4096))                  # cap padding waste
    tb = min(tb, _round_up(B, row_align))
    Bp = _round_up(B, tb)
    ntiles = Bp // tb
    # TODO(synk): for extremely large C (>~500k labels) the minimum
    # (row_align, Cp) block no longer fits VMEM; a column-tiled grid would be
    # needed.

    x, t = inputs, targets
    if Bp != B or Cp != C:
        # Padded elements (logit=-1e4, target=0) contribute exactly 0.
        x = jnp.pad(x, ((0, Bp - B), (0, Cp - C)), constant_values=_PAD_LOGIT)
        t = jnp.pad(t, ((0, Bp - B), (0, Cp - C)), constant_values=0)

    in_specs = [
        pl.BlockSpec((tb, Cp), lambda i: (i, 0)),
        pl.BlockSpec((tb, Cp), lambda i: (i, 0)),
    ]

    out_block_bytes = (tb if reduction == "none" else 8) * Cp * 4
    live_bytes = 2 * tb * Cp * (x_item + t_item) + 2 * out_block_bytes
    vmem_limit = min(max(int(live_bytes * 1.25) + (2 << 20), 16 << 20), 48 << 20)
    cparams = pltpu.CompilerParams(
        dimension_semantics=("parallel",),
        vmem_limit_bytes=vmem_limit,
    )

    if reduction == "none":
        kernel = functools.partial(_focal_elementwise_kernel,
                                   alpha=float(alpha), gamma=float(gamma),
                                   binary_targets=binary_targets)
        out = pl.pallas_call(
            kernel,
            out_shape=jax.ShapeDtypeStruct((Bp, Cp), jnp.float32),
            grid_spec=pltpu.PrefetchScalarGridSpec(
                num_scalar_prefetch=0,
                grid=(ntiles,),
                in_specs=in_specs,
                out_specs=pl.BlockSpec((tb, Cp), lambda i: (i, 0)),
            ),
            compiler_params=cparams,
        )(x, t)
        return out[:B, :C]

    if reduction not in ("mean", "sum"):
        raise ValueError(f"unknown reduction: {reduction}")

    kernel = functools.partial(_focal_partial_kernel,
                               alpha=float(alpha), gamma=float(gamma),
                               binary_targets=binary_targets)
    partials = pl.pallas_call(
        kernel,
        out_shape=jax.ShapeDtypeStruct((ntiles * 8, Cp), jnp.float32),
        grid_spec=pltpu.PrefetchScalarGridSpec(
            num_scalar_prefetch=0,
            grid=(ntiles,),
            in_specs=in_specs,
            out_specs=pl.BlockSpec((8, Cp), lambda i: (i, 0)),
        ),
        compiler_params=cparams,
    )(x, t)

    total = jnp.sum(partials)
    if reduction == "mean":
        total = total / jnp.float32(B * C)
    return total


def focal_loss_reference(inputs, targets, alpha=1.0, gamma=2.0, reduction="mean"):
    """Plain-JAX reference mirroring the PyTorch module literally."""
    x = inputs.astype(jnp.float32)
    t = targets.astype(jnp.float32)
    bce = jnp.maximum(x, 0.0) - x * t + jnp.log(1.0 + jnp.exp(-jnp.abs(x)))
    pt = jnp.exp(-bce)
    focal = alpha * (1.0 - pt) ** gamma * bce
    if reduction == "mean":
        return focal.mean()
    if reduction == "sum":
        return focal.sum()
    return focal


if __name__ == "__main__":
    key = jax.random.PRNGKey(0)
    k1, k2, k3, k4 = jax.random.split(key, 4)

    # Small multi-label problem; targets passed as bf16 ({0,1} exact) to
    # exercise the compact-target path.
    B, C = 16, 256
    logits = jax.random.normal(k1, (B, C), dtype=jnp.float32) * 2.0
    targets = (jax.random.uniform(k2, (B, C)) > 0.7).astype(jnp.bfloat16)

    out = focal_loss(logits, targets, alpha=1.0, gamma=2.0, reduction="mean")
    out = jax.block_until_ready(out)
    ref = focal_loss_reference(logits, targets, 1.0, 2.0, "mean")
    assert jnp.abs(out - ref) <= 1e-5 * jnp.maximum(1.0, jnp.abs(ref)), (out, ref)

    # Unaligned shapes exercise the pad-to-tile path; also test sum / none.
    B2, C2 = 13, 200
    logits2 = jax.random.normal(k3, (B2, C2), dtype=jnp.float32) * 2.0
    targets2 = (jax.random.uniform(k4, (B2, C2)) > 0.6).astype(jnp.float32)

    s = jax.block_until_ready(focal_loss(logits2, targets2, reduction="sum"))
    s_ref = focal_loss_reference(logits2, targets2, reduction="sum")
    assert jnp.abs(s - s_ref) <= 1e-4 * jnp.maximum(1.0, jnp.abs(s_ref)), (s, s_ref)

    e = jax.block_until_ready(focal_loss(logits2, targets2, reduction="none"))
    e_ref = focal_loss_reference(logits2, targets2, reduction="none")
    assert e.shape == (B2, C2)
    assert jnp.max(jnp.abs(e - e_ref)) <= 2e-5, jnp.max(jnp.abs(e - e_ref))

    print("KERNEL_OK")
</pallas_src>

<mosaic_0001>
module attributes {stable_mosaic.version = 11 : i64} {
  func.func @_focal_partial_kernel(%arg0: i32, %arg1: memref<16x256xf32, #tpu.memory_space<vmem>>, %arg2: memref<16x256xbf16, #tpu.memory_space<vmem>>, %arg3: memref<8x256xf32, #tpu.memory_space<vmem>>) attributes {dimension_semantics = [#tpu.dimension_semantics<parallel>], iteration_bounds = array<i64: 1>, scalar_prefetch = 0 : i64, scratch_operands = 0 : i64, tpu.core_type = #tpu.core_type<tc>, window_params = [{transform_indices = @transform_0, window_bounds = array<i64: 16, 256>}, {transform_indices = @transform_1, window_bounds = array<i64: 16, 256>}, {transform_indices = @transform_2, window_bounds = array<i64: 8, 256>}]} {
    %c0 = arith.constant 0 : index
    %c0_0 = arith.constant 0 : index
    %0 = vector.load %arg1[%c0, %c0_0] : memref<16x256xf32, #tpu.memory_space<vmem>>, vector<16x256xf32>
    %c0_1 = arith.constant 0 : index
    %c0_2 = arith.constant 0 : index
    %1 = vector.load %arg2[%c0_1, %c0_2] : memref<16x256xbf16, #tpu.memory_space<vmem>>, vector<16x256xbf16>
    %2 = arith.extf %1 : vector<16x256xbf16> to vector<16x256xf32>
    %3 = math.absf %0 : vector<16x256xf32>
    %cst = arith.constant 0.000000e+00 : f32
    %4 = vector.broadcast %cst : f32 to vector<16x256xf32>
    %5 = arith.subf %4, %3 : vector<16x256xf32>
    %6 = math.exp %5 : vector<16x256xf32>
    %cst_3 = arith.constant 0.000000e+00 : f32
    %7 = vector.broadcast %cst_3 : f32 to vector<16x256xf32>
    %8 = arith.maximumf %0, %7 : vector<16x256xf32>
    %9 = arith.mulf %0, %2 : vector<16x256xf32>
    %10 = arith.subf %8, %9 : vector<16x256xf32>
    %cst_4 = arith.constant 1.000000e+00 : f32
    %11 = vector.broadcast %cst_4 : f32 to vector<16x256xf32>
    %12 = arith.addf %11, %6 : vector<16x256xf32>
    %13 = math.log %12 : vector<16x256xf32>
    %14 = arith.addf %10, %13 : vector<16x256xf32>
    %cst_5 = arith.constant 1.000000e+00 : f32
    %15 = vector.broadcast %cst_5 : f32 to vector<16x256xf32>
    %16 = arith.addf %15, %6 : vector<16x256xf32>
    %cst_6 = arith.constant 1.000000e+00 : f32
    %17 = vector.broadcast %cst_6 : f32 to vector<16x256xf32>
    %18 = arith.divf %17, %16 : vector<16x256xf32>
    %cst_7 = arith.constant 2.000000e+00 : f32
    %19 = vector.broadcast %cst_7 : f32 to vector<16x256xf32>
    %20 = arith.mulf %19, %2 : vector<16x256xf32>
    %cst_8 = arith.constant 1.000000e+00 : f32
    %21 = vector.broadcast %cst_8 : f32 to vector<16x256xf32>
    %22 = arith.subf %20, %21 : vector<16x256xf32>
    %23 = arith.mulf %22, %0 : vector<16x256xf32>
    %cst_9 = arith.constant 0.000000e+00 : f32
    %24 = vector.broadcast %cst_9 : f32 to vector<16x256xf32>
    %25 = arith.cmpf oge, %23, %24 : vector<16x256xf32>
    %26 = arith.mulf %6, %18 : vector<16x256xf32>
    %27 = arith.select %25, %18, %26 : vector<16x256xi1>, vector<16x256xf32>
    %cst_10 = arith.constant 1.000000e+00 : f32
    %28 = vector.broadcast %cst_10 : f32 to vector<16x256xf32>
    %29 = arith.subf %28, %27 : vector<16x256xf32>
    %30 = arith.mulf %29, %29 : vector<16x256xf32>
    %cst_11 = arith.constant 1.000000e+00 : f32
    %31 = vector.broadcast %cst_11 : f32 to vector<16x256xf32>
    %32 = arith.mulf %31, %30 : vector<16x256xf32>
    %33 = arith.mulf %32, %14 : vector<16x256xf32>
    %34 = vector.shape_cast %33 : vector<16x256xf32> to vector<2x8x256xf32>
    %cst_12 = arith.constant dense<0.000000e+00> : vector<8x256xf32>
    %35 = vector.multi_reduction <add>, %34, %cst_12 [0] : vector<2x8x256xf32> to vector<8x256xf32>
    %c0_13 = arith.constant 0 : index
    %c0_14 = arith.constant 0 : index
    %36 = vector.load %arg3[%c0_13, %c0_14] : memref<8x256xf32, #tpu.memory_space<vmem>>, vector<8x256xf32>
    tpu.vector_store %arg3[%c0_13, %c0_14], %35 {strides = array<i32>} : memref<8x256xf32, #tpu.memory_space<vmem>>, vector<8x256xf32>,
    return
  }
  func.func @transform_0(%arg0: i32) -> (i32, i32) {
    %c0_i32 = arith.constant 0 : i32
    %c0_i32_0 = arith.constant 0 : i32
    return %arg0, %c0_i32 : i32, i32
  }
  func.func @transform_1(%arg0: i32) -> (i32, i32) {
    %c0_i32 = arith.constant 0 : i32
    %c0_i32_0 = arith.constant 0 : i32
    return %arg0, %c0_i32 : i32, i32
  }
  func.func @transform_2(%arg0: i32) -> (i32, i32) {
    %c0_i32 = arith.constant 0 : i32
    %c0_i32_0 = arith.constant 0 : i32
    return %arg0, %c0_i32 : i32, i32
  }
}

</mosaic_0001>

<bundles_post_ra>
// kernel: tpu_custom_call.1
= control target key start
LH: loop header
LB: loop body
LE: loop exit
PB: predicated region body
PF: predicated region fallthrough
CT: control target
= control target key end

     0   :  { %7 = vsyncpa [#allocation3], 0  ;;  %s319_s0 = inlined_call_operand.hbm [shape: f32[16,256], index: 0, kind: input, shape index: {}]   ;;  %s320_s1 = inlined_call_operand.hbm [shape: bf16[16,256], index: 1, kind: input, shape index: {}]   ;;  %s321_s2 = inlined_call_operand.hbm [shape: f32[8,256], index: 2, kind: output, shape index: {}]  }
   0x1   :  { %8 = vsyncpa [#allocation6], 0 }
   0x2   :  { %9 = vsyncpa [#allocation4], 0  ;;  %s259_s9 = smov [#allocation2]  }
   0x3   :  { %s15_s10 = sshll.u32 %s259_s9, 4  ;;  %s16_s10 = int_to_ptr.vmem [resolvable:$true] %s15_s10 }
   0x4   :  { %s201_s11 = scalar_lea.vmem %s16_s10, 512  ;;  %p206_p1 = scmp.lt.s32.totalorder %s16_s10, %s16_s10 }
   0x5   :  { %p202_p0 = scmp.ne.s32.totalorder %s16_s10, %s201_s11  ;;  %p207_p2 = scmp.lt.s32.totalorder %s201_s11, %s201_s11 }
   0x7   :  { %p208_p3 = por %p207_p2, %p206_p1 }
   0x9   :  { %p209_p4 = pnand %p208_p3, %p202_p0 }
   0xb   :  { %212 = shalt.err (!%p209_p4)
}
   0xc   :  { %s260_s12 = smov 256   ;;  %s261_s13 = smov 16  }
   0xd   :  { %21 = dma.hbm_to_vmem [thread:$0]  %s319_s0, 512, %s16_s10, [#allocation3], %s260_s12, %s260_s12, %s261_s13  }
   0xe   :  { %s262_s16 = smov [#allocation5]  }
   0xf   :  { %s27_s17 = sshll.u32 %s262_s16, 4  ;;  %s28_s17 = int_to_ptr.vmem [resolvable:$true] %s27_s17 }
  0x10   :  { %s221_s18 = scalar_lea.vmem %s28_s17, 256  ;;  %p226_p6 = scmp.lt.s32.totalorder %s28_s17, %s28_s17 }
  0x11   :  { %p222_p5 = scmp.ne.s32.totalorder %s28_s17, %s221_s18  ;;  %p227_p7 = scmp.lt.s32.totalorder %s221_s18, %s221_s18 }
  0x13   :  { %p228_p8 = por %p227_p7, %p226_p6 }
  0x15   :  { %p229_p9 = pnand %p228_p8, %p222_p5 }
  0x17   :  { %232 = shalt.err (!%p229_p9)
}
  0x18   :  { %s263_s19 = smov 128   ;;  %s264_s20 = smov 8  }
  0x19   :  { %33 = dma.hbm_to_vmem [thread:$0]  %s320_s1, 256, %s28_s17, [#allocation6], %s263_s19, %s263_s19, %s264_s20  }
  0x1a   :  { %253 = dma.done.wait [#allocation3], 512  }
  0x1b   :  { %254 = vsyncadd [#allocation3], 4294966784 }
  0x1c   :  { %255 = dma.done.wait [#allocation6], 256  }
  0x1d   :  { %256 = vsyncadd [#allocation6], 4294967040  ;;  %v287_v0 = vld [vmem:[#allocation2] sm:$0xff]  ;;  %v289_v1 = vld [vmem:[#allocation2 + $0x10] sm:$0xff]  ;;  %s265_s0 = smov [#allocation7]  }
  0x1e   :  { %v50_v2 = vand.u32 2147483647, %v287_v0  ;;  %v52_v3 = vand.u32 2147483647, %v289_v1  ;;  %v293_v4 = vld [vmem:[#allocation2 + $0x8] sm:$0xff]  ;;  %v295_v5 = vld [vmem:[#allocation2 + $0x18] sm:$0xff] }
  0x1f   :  { %v51_v8 = vand.u32 2147483647, %v293_v4  ;;  %v53_v9 = vand.u32 2147483647, %v295_v5  ;;  %v44_v16 = vld [vmem:[#allocation5] sm:$0xff]  ;;  %v45_v18 = vld [vmem:[#allocation5 + $0x8] sm:$0xff] }
  0x20   :  { %v54_v6 = vsub.f32 0.0, %v50_v2  ;;  %v56_v7 = vsub.f32 0.0, %v52_v3  ;;  %v46_v21 = vunpack.c.l.bf16 %v44_v16  ;;  %v48_v24 = vunpack.c.l.bf16 %v45_v18  ;;  %s148_s1 = sshll.u32 %s265_s0, 4  ;;  %s149_s1 = int_to_ptr.vmem [resolvable:$true] %s148_s1 }
  0x21   :  { %v55_v12 = vsub.f32 0.0, %v51_v8  ;;  %v57_v13 = vsub.f32 0.0, %v53_v9  ;;  %v47_v26 = vunpack.c.h.bf16 %v44_v16  ;;  %v49_v27 = vunpack.c.h.bf16 %v45_v18  ;;  %s233_s23 = scalar_lea.vmem %s149_s1, 256  ;;  %p238_p11 = scmp.lt.s32.totalorder %s149_s1, %s149_s1 }
  0x22   :  { %v58_v10 = vmul.f32 1.442695, %v54_v6  ;;  %v62_v11 = vmul.f32 1.442695, %v56_v7  ;;  %v102_v29 = vmul.f32 2.0, %v46_v21  ;;  %v104_v31 = vmul.f32 2.0, %v48_v24  ;;  %p234_p10 = scmp.ne.s32.totalorder %s149_s1, %s233_s23  ;;  %p239_p12 = scmp.lt.s32.totalorder %s233_s23, %s233_s23 }
  0x23   :  { %v60_v14 = vmul.f32 1.442695, %v55_v12  ;;  %v64_v15 = vmul.f32 1.442695, %v57_v13  ;;  %v103_v32 = vmul.f32 2.0, %v47_v26  ;;  %v105_v33 = vmul.f32 2.0, %v49_v27 }
  0x24   :  { %169 = vpow2.f32 %v58_v10  ;;  %v158_v34 = vadd.f32 -1.0, %v102_v29  ;;  %v160_v35 = vadd.f32 -1.0, %v104_v31  ;;  %v66_v38 = vmax.f32 %v287_v0, 0.0  ;;  %p240_p13 = por %p239_p12, %p238_p11 }
  0x25   :  { %171 = vpow2.f32 %v62_v11  ;;  %v159_v36 = vadd.f32 -1.0, %v103_v32  ;;  %v161_v37 = vadd.f32 -1.0, %v105_v33  ;;  %v70_v39 = vmul.f32 %v46_v21, %v287_v0 }
  0x26   :  { %173 = vpow2.f32 %v60_v14  ;;  %v110_v40 = vmul.f32 %v158_v34, %v287_v0  ;;  %v68_v41 = vmax.f32 %v289_v1, 0.0  ;;  %v72_v42 = vmul.f32 %v48_v24, %v289_v1  ;;  %p241_p0 = pnand %p240_p13, %p234_p10 }
  0x27   :  { %175 = vpow2.f32 %v64_v15  ;;  %v112_v43 = vmul.f32 %v160_v35, %v289_v1  ;;  %v67_v45 = vmax.f32 %v293_v4, 0.0  ;;  %v71_v46 = vmul.f32 %v47_v26, %v293_v4 }
  0x28   :  { %v69_v48 = vmax.f32 %v295_v5, 0.0  ;;  %v73_v49 = vmul.f32 %v49_v27, %v295_v5  ;;  %v111_v50 = vmul.f32 %v159_v36, %v293_v4  ;;  %v113_v51 = vmul.f32 %v161_v37, %v295_v5 }
  0x29   :  { %v74_v53 = vsub.f32 %v66_v38, %v70_v39  ;;  %vm114_vm0 = vcmp.ge.f32.partialorder %v110_v40, 0.0  ;;  %v76_v56 = vsub.f32 %v68_v41, %v72_v42  ;;  %vm116_vm1 = vcmp.ge.f32.partialorder %v112_v43, 0.0 }
  0x2a   :  { %v75_v61 = vsub.f32 %v67_v45, %v71_v46  ;;  %v77_v0 = vsub.f32 %v69_v48, %v73_v49  ;;  %vm115_vm2 = vcmp.ge.f32.partialorder %v111_v50, 0.0  ;;  %vm117_vm3 = vcmp.ge.f32.partialorder %v113_v51, 0.0 }
  0x31   :  { %v170_v17 = vpop.eup %169 }
  0x32   :  { %v172_v19 = vpop.eup %171  ;;  %v78_v20 = vadd.f32 1.0, %v170_v17 }
  0x33   :  { %v80_v22 = vadd.f32 1.0, %v172_v19  ;;  %v299_v23 = vpop.eup %173 }
  0x34   :  { %177 = vlog2.f32 %v78_v20  ;;  %v176_v25 = vpop.eup %175  ;;  %v79_v28 = vadd.f32 1.0, %v299_v23 }
  0x35   :  { %179 = vlog2.f32 %v80_v22  ;;  %v81_v30 = vadd.f32 1.0, %v176_v25 }
  0x36   :  { %181 = vrcp.f32 %v78_v20 }
  0x37   :  { %183 = vrcp.f32 %v80_v22 }
  0x38   :  { %185 = vlog2.f32 %v79_v28 }
  0x39   :  { %187 = vlog2.f32 %v81_v30 }
  0x3a   :  { %189 = vrcp.f32 %v79_v28 }
  0x3b   :  { %191 = vrcp.f32 %v81_v30 }
  0x41   :  { %v178_v44 = vpop.eup %177 }
  0x42   :  { %v180_v47 = vpop.eup %179  ;;  %v83_v54 = vmul.f32 0.6931472, %v178_v44 }
  0x43   :  { %v182_v52 = vpop.eup %181  ;;  %v87_v57 = vmul.f32 0.6931472, %v180_v47 }
  0x44   :  { %v184_v55 = vpop.eup %183  ;;  %v118_v58 = vmul.f32 %v182_v52, %v170_v17  ;;  %v90_v2 = vadd.f32 %v83_v54, %v74_v53 }
  0x45   :  { %v186_v59 = vpop.eup %185  ;;  %v120_v60 = vmul.f32 %v184_v55, %v172_v19  ;;  %v92_v7 = vadd.f32 %v87_v57, %v76_v56 }
  0x46   :  { %v188_v62 = vpop.eup %187  ;;  %v122_v63 = vsel %vm114_vm0, %v182_v52, %v118_v58  ;;  %v85_v5 = vmul.f32 0.6931472, %v186_v59 }
  0x47   :  { %v190_v1 = vpop.eup %189  ;;  %v124_v3 = vsel %vm116_vm1, %v184_v55, %v120_v60  ;;  %v126_v4 = vsub.f32 1.0, %v122_v63  ;;  %v89_v9 = vmul.f32 0.6931472, %v188_v62 }
  0x48   :  { %v192_v6 = vpop.eup %191  ;;  %v128_v8 = vsub.f32 1.0, %v124_v3  ;;  %v119_v10 = vmul.f32 %v190_v1, %v299_v23  ;;  %v91_v16 = vadd.f32 %v85_v5, %v75_v61 }
  0x49   :  { %v130_v11 = vmul.f32 %v126_v4, %v126_v4  ;;  %v121_v12 = vmul.f32 %v192_v6, %v176_v25  ;;  %v93_v20 = vadd.f32 %v89_v9, %v77_v0 }
  0x4a   :  { %v132_v13 = vmul.f32 %v128_v8, %v128_v8  ;;  %v123_v14 = vsel %vm115_vm2, %v190_v1, %v119_v10 }
  0x4b   :  { %v134_v15 = vmul.f32 %v130_v11, %v90_v2  ;;  %v125_v17 = vsel %vm117_vm3, %v192_v6, %v121_v12  ;;  %v127_v18 = vsub.f32 1.0, %v123_v14 }
  0x4c   :  { %v136_v19 = vmul.f32 %v132_v13, %v92_v7  ;;  %v129_v21 = vsub.f32 1.0, %v125_v17 }
  0x4d   :  { %v131_v22 = vmul.f32 %v127_v18, %v127_v18 }
  0x4e   :  { %v138_v24 = vadd.f32 %v136_v19, %v134_v15  ;;  %v133_v26 = vmul.f32 %v129_v21, %v129_v21 }
  0x4f   :  { %v135_v27 = vmul.f32 %v131_v22, %v91_v16 }
  0x50   :  { %140 = vst [vmem:[#allocation7] sm:$0xff] %v138_v24  ;;  %v137_v23 = vmul.f32 %v133_v26, %v93_v20 }
  0x52   :  { %v139_v28 = vadd.f32 %v137_v23, %v135_v27 }
  0x54   :  { %141 = vst [vmem:[#allocation7 + $0x8] sm:$0xff] %v139_v28 }
  0x55   :  { %244 = shalt.err (!%p241_p0)
}
  0x56   :  { %151 = dma.vmem_to_hbm [thread:$0]  %s149_s1, 256, %s321_s2, [#allocation4]  }
  0x57   :  { %257 = dma.done.wait [#allocation4], 256  }
  0x58   :  { %258 = vsyncadd [#allocation4], 4294967040 }
  0x59   :  { %155 = vsyncpa [#allocation3], 1 }
  0x5a   :  { %156 = vsyncpa [#allocation6], 1 }
  0x5b   :  { %157 = vsyncpa [#allocation4], 1 }

</bundles_post_ra>
